<compile_context>
chip_gen: v7x
topology: tpu7x:2x2x1
jax: 0.10.0
libtpu: 0.0.40
codegen_flags: <defaults>
</compile_context>

<pallas_src>
import numpy as np
import jax
import jax.numpy as jnp
from jax.experimental import pallas as pl
from jax.experimental.pallas import tpu as pltpu

_EPS = 1e-5
_MAX_TP = 2048  # max lane tile along the flattened spatial axis (multiple of 128)


def _round_up(x, m):
    return -(-x // m) * m


def _make_stats_kernel(s_valid, tp):
    """Builds the per-(batch, spatial-tile) statistics kernel.

    Inputs (VMEM tiles):
      vox_logits (Cv, TP), vox_tgt (1, TP) i32, ends_logits (Ce, TP), ends_tgt (1, TP) i32
    Outputs (lane-dense accumulators, resident in VMEM across the tile axis):
      vox_nll (Cv, TP), vox_cnt (Cv, TP), ends_nll (Ce, TP), ends_cnt (Ce, TP), mask_cnt (1, TP)
    """

    def kernel(vox_logits_ref, vox_tgt_ref, ends_logits_ref, ends_tgt_ref,
               vox_nll_ref, vox_cnt_ref, ends_nll_ref, ends_cnt_ref, mask_cnt_ref):
        t = pl.program_id(1)

        # Zero the resident accumulators at the start of each batch row.
        @pl.when(t == 0)
        def _():
            vox_nll_ref[...] = jnp.zeros_like(vox_nll_ref)
            vox_cnt_ref[...] = jnp.zeros_like(vox_cnt_ref)
            ends_nll_ref[...] = jnp.zeros_like(ends_nll_ref)
            ends_cnt_ref[...] = jnp.zeros_like(ends_cnt_ref)
            mask_cnt_ref[...] = jnp.zeros_like(mask_cnt_ref)

        vox_logits = vox_logits_ref[...].astype(jnp.float32)     # (Cv, TP)
        vox_tgt = vox_tgt_ref[...]                               # (1, TP) i32
        cv = vox_logits.shape[0]

        # Validity mask for the (compile-time known) padded tail of the spatial axis.
        if s_valid % tp != 0:
            lane = jax.lax.broadcasted_iota(jnp.int32, (1, tp), 1)
            valid = (t * tp + lane) < s_valid                    # (1, TP) bool
        else:
            valid = None

        # ---- vox branch: weighted-CE statistics over every (valid) voxel ----
        cls_v = jax.lax.broadcasted_iota(jnp.int32, (cv, tp), 0)
        hit_v = cls_v == vox_tgt
        if valid is not None:
            hit_v = jnp.logical_and(hit_v, valid)
        onehot_v = hit_v.astype(jnp.float32)                     # (Cv, TP)

        m_v = jnp.max(vox_logits, axis=0, keepdims=True)         # (1, TP)
        lse_v = m_v + jnp.log(jnp.sum(jnp.exp(vox_logits - m_v), axis=0, keepdims=True))
        tlogit_v = jnp.sum(onehot_v * vox_logits, axis=0, keepdims=True)
        nll_v = lse_v - tlogit_v                                 # (1, TP)

        vox_nll_ref[...] += onehot_v * nll_v                     # lane-dense accumulate
        vox_cnt_ref[...] += onehot_v

        # ---- ends branch: CE statistics restricted to target_vox > 0 ---------
        mask = vox_tgt > 0                                       # (1, TP) bool
        if valid is not None:
            mask = jnp.logical_and(mask, valid)
        ends_logits = ends_logits_ref[...].astype(jnp.float32)   # (Ce, TP)
        ends_tgt = ends_tgt_ref[...]                             # (1, TP) i32
        ce = ends_logits.shape[0]

        cls_e = jax.lax.broadcasted_iota(jnp.int32, (ce, tp), 0)
        onehot_e = jnp.logical_and(cls_e == ends_tgt, mask).astype(jnp.float32)

        m_e = jnp.max(ends_logits, axis=0, keepdims=True)
        lse_e = m_e + jnp.log(jnp.sum(jnp.exp(ends_logits - m_e), axis=0, keepdims=True))
        tlogit_e = jnp.sum(onehot_e * ends_logits, axis=0, keepdims=True)
        nll_e = lse_e - tlogit_e    # garbage outside the mask, but zeroed by onehot_e below

        ends_nll_ref[...] += onehot_e * nll_e
        ends_cnt_ref[...] += onehot_e
        mask_cnt_ref[...] += mask.astype(jnp.float32)

    return kernel


def _run_stats(vox_logits, vox_tgt, ends_logits, ends_tgt, s_valid, tp):
    """vox_logits (N, Cv, S_pad), ends_logits (N, Ce, S_pad), targets (N, 1, S_pad)."""
    n, cv, s_pad = vox_logits.shape
    ce = ends_logits.shape[1]
    assert s_pad % tp == 0
    num_tiles = s_pad // tp

    def in_spec(c):
        return pl.BlockSpec((pl.Squeezed(), c, tp), lambda i, t: (i, 0, t))

    def acc_spec(c):
        # Constant block index along the tile axis -> resident VMEM accumulator.
        return pl.BlockSpec((pl.Squeezed(), c, tp), lambda i, t: (i, 0, 0))

    out_shape = (
        jax.ShapeDtypeStruct((n, cv, tp), jnp.float32),  # per-class per-lane sum of nll (vox)
        jax.ShapeDtypeStruct((n, cv, tp), jnp.float32),  # per-class per-lane count      (vox)
        jax.ShapeDtypeStruct((n, ce, tp), jnp.float32),  # per-class per-lane sum of nll (ends, masked)
        jax.ShapeDtypeStruct((n, ce, tp), jnp.float32),  # per-class per-lane count      (ends, masked)
        jax.ShapeDtypeStruct((n, 1, tp), jnp.float32),   # per-lane count of masked voxels
    )

    return pl.pallas_call(
        _make_stats_kernel(s_valid, tp),
        out_shape=out_shape,
        grid_spec=pltpu.PrefetchScalarGridSpec(
            num_scalar_prefetch=0,
            grid=(n, num_tiles),
            in_specs=[in_spec(cv), in_spec(1), in_spec(ce), in_spec(1)],
            out_specs=[acc_spec(cv), acc_spec(cv), acc_spec(ce), acc_spec(ce), acc_spec(1)],
        ),
        compiler_params=pltpu.CompilerParams(
            dimension_semantics=("parallel", "arbitrary")),
    )(vox_logits, vox_tgt, ends_logits, ends_tgt)


def vox_ends_embedding_loss(input_vox, input_ends, input_emb, input_seeds,
                            target_vox, target_ends, target_ins,
                            weight_vox=None, weight_ends=None, with_weight=True,
                            max_tile=_MAX_TP):
    """JAX/Pallas port of VoxEndsEmbeddingLoss.forward (as given, i.e. the
    VoxEndsLoss part; the embedding/seed terms are truncated in the source)."""
    n, cv = int(input_vox.shape[0]), int(input_vox.shape[1])
    ce = int(input_ends.shape[1])
    s = int(np.prod(input_vox.shape[2:]))

    # Reshape-only views (no transpose, no host-side f32 cast): (N, C, S) / (N, 1, S).
    vox_logits = input_vox.reshape(n, cv, s)
    ends_logits = input_ends.reshape(n, ce, s)
    vox_tgt = target_vox.reshape(n, 1, s).astype(jnp.int32)
    ends_tgt = target_ends.reshape(n, 1, s).astype(jnp.int32)

    tp = min(max_tile, _round_up(s, 128))
    s_pad = _round_up(s, tp)
    if s_pad != s:
        pad = ((0, 0), (0, 0), (0, s_pad - s))
        vox_logits = jnp.pad(vox_logits, pad)
        ends_logits = jnp.pad(ends_logits, pad)
        vox_tgt = jnp.pad(vox_tgt, pad)
        ends_tgt = jnp.pad(ends_tgt, pad)

    vox_nll_p, vox_cnt_p, ends_nll_p, ends_cnt_p, mask_cnt_p = _run_stats(
        vox_logits, vox_tgt, ends_logits, ends_tgt, s_valid=s, tp=tp)

    # Tiny cross-lane / cross-batch reductions + per-class weight math (plain JAX).
    vox_nll = jnp.sum(vox_nll_p, axis=(0, 2))     # (Cv,)
    vox_cnt = jnp.sum(vox_cnt_p, axis=(0, 2))     # (Cv,)
    ends_nll = jnp.sum(ends_nll_p, axis=(0, 2))   # (Ce,)
    ends_cnt = jnp.sum(ends_cnt_p, axis=(0, 2))   # (Ce,)
    num_sel = jnp.sum(mask_cnt_p)                 # |{target_vox > 0}| (NaN downstream if 0,
                                                  #  matching the PyTorch reference behavior)
    numel_vox = jnp.float32(n * s)

    if with_weight:
        if weight_vox is not None:
            w_vox = jnp.asarray(weight_vox, jnp.float32)
        else:
            w_vox = 1.0 - vox_cnt / numel_vox + _EPS
        if weight_ends is not None:
            w_ends = jnp.asarray(weight_ends, jnp.float32)
        else:
            w_ends = 1.0 - ends_cnt / num_sel + _EPS
        loss_vox = jnp.sum(w_vox * vox_nll) / jnp.sum(w_vox * vox_cnt)
        loss_ends = jnp.sum(w_ends * ends_nll) / jnp.sum(w_ends * ends_cnt)
    else:
        loss_vox = jnp.sum(vox_nll) / numel_vox
        loss_ends = jnp.sum(ends_nll) / num_sel

    # TODO(synk): the embedding/seed loss terms (emb_criterion on input_emb /
    # input_seeds / target_ins) are truncated in the reference forward; only the
    # VoxEndsLoss part is computed here.
    del input_emb, input_seeds, target_ins
    return loss_vox + loss_ends


# ----------------------------- pure-JAX reference ----------------------------
def _to_class_major(x):
    """(N, C, *spatial) -> (C, N*prod(spatial))"""
    c = x.shape[1]
    return jnp.moveaxis(x, 1, 0).reshape(c, -1)


def _reference_loss(input_vox, input_ends, target_vox, target_ends, with_weight=True):
    cv = input_vox.shape[1]
    ce = input_ends.shape[1]
    vox_logits = _to_class_major(input_vox).astype(jnp.float32)    # (Cv, P)
    ends_logits = _to_class_major(input_ends).astype(jnp.float32)  # (Ce, P)
    tv = target_vox.reshape(-1).astype(jnp.int32)
    te = target_ends.reshape(-1).astype(jnp.int32)
    p = tv.shape[0]

    logp_v = jax.nn.log_softmax(vox_logits, axis=0)
    nll_v = -jnp.take_along_axis(logp_v, tv[None, :], axis=0)[0]   # (P,)
    logp_e = jax.nn.log_softmax(ends_logits, axis=0)
    nll_e = -jnp.take_along_axis(logp_e, te[None, :], axis=0)[0]

    mask = (tv > 0).astype(jnp.float32)
    m = jnp.sum(mask)

    cnt_v = jnp.stack([jnp.sum((tv == i).astype(jnp.float32)) for i in range(cv)])
    cnt_e = jnp.stack([jnp.sum(((te == i).astype(jnp.float32)) * mask) for i in range(ce)])

    if with_weight:
        w_v = 1.0 - cnt_v / p + _EPS
        w_e = 1.0 - cnt_e / m + _EPS
        wt_v = w_v[tv]
        wt_e = w_e[te] * mask
        loss_vox = jnp.sum(wt_v * nll_v) / jnp.sum(wt_v)
        loss_ends = jnp.sum(wt_e * nll_e) / jnp.sum(wt_e)
    else:
        loss_vox = jnp.mean(nll_v)
        loss_ends = jnp.sum(mask * nll_e) / m
    return loss_vox + loss_ends


if __name__ == "__main__":
    key = jax.random.PRNGKey(0)
    keys = jax.random.split(key, 8)

    # -------- Config A: small 2-D NCHW case (single tile, no padding) --------
    N, Cv, Ce, H, W = 2, 4, 3, 16, 16
    D_emb, n_seeds = 8, 5
    input_vox = jax.random.normal(keys[0], (N, Cv, H, W), dtype=jnp.float32)
    input_ends = jax.random.normal(keys[1], (N, Ce, H, W), dtype=jnp.float32)
    target_vox = jax.random.randint(keys[2], (N, H, W), 0, Cv)
    target_ends = jax.random.randint(keys[3], (N, H, W), 0, Ce)
    # Unused (truncated) inputs, kept for signature fidelity.
    input_emb = jax.random.normal(keys[4], (N, D_emb, H, W), dtype=jnp.float32)
    input_seeds = jax.random.normal(keys[5], (N, 1, H, W), dtype=jnp.float32)
    target_ins = jax.random.randint(keys[2], (N, H, W), 0, n_seeds)

    loss = jax.block_until_ready(vox_ends_embedding_loss(
        input_vox, input_ends, input_emb, input_seeds,
        target_vox, target_ends, target_ins))
    ref = jax.block_until_ready(
        _reference_loss(input_vox, input_ends, target_vox, target_ends))
    np.testing.assert_allclose(np.asarray(loss), np.asarray(ref), rtol=2e-5, atol=2e-5)

    loss_nw = jax.block_until_ready(vox_ends_embedding_loss(
        input_vox, input_ends, input_emb, input_seeds,
        target_vox, target_ends, target_ins, with_weight=False))
    ref_nw = jax.block_until_ready(
        _reference_loss(input_vox, input_ends, target_vox, target_ends, with_weight=False))
    np.testing.assert_allclose(np.asarray(loss_nw), np.asarray(ref_nw), rtol=2e-5, atol=2e-5)

    # ---- Config B: 3-D NCDHW case exercising multi-tile grid + padded-tail mask ----
    N2, D2, H2, W2 = 2, 4, 24, 24            # S = 2304 -> 2 tiles of 2048, padded to 4096
    input_vox2 = jax.random.normal(keys[6], (N2, Cv, D2, H2, W2), dtype=jnp.float32)
    input_ends2 = jax.random.normal(keys[7], (N2, Ce, D2, H2, W2), dtype=jnp.float32)
    target_vox2 = jax.random.randint(keys[2], (N2, D2, H2, W2), 0, Cv)
    target_ends2 = jax.random.randint(keys[3], (N2, D2, H2, W2), 0, Ce)
    input_emb2 = jax.random.normal(keys[4], (N2, D_emb, D2, H2, W2), dtype=jnp.float32)
    input_seeds2 = jax.random.normal(keys[5], (N2, 1, D2, H2, W2), dtype=jnp.float32)
    target_ins2 = jax.random.randint(keys[2], (N2, D2, H2, W2), 0, n_seeds)

    loss2 = jax.block_until_ready(vox_ends_embedding_loss(
        input_vox2, input_ends2, input_emb2, input_seeds2,
        target_vox2, target_ends2, target_ins2))
    ref2 = jax.block_until_ready(
        _reference_loss(input_vox2, input_ends2, target_vox2, target_ends2))
    np.testing.assert_allclose(np.asarray(loss2), np.asarray(ref2), rtol=2e-5, atol=2e-5)

    print("KERNEL_OK")
</pallas_src>

<mosaic_0001>
module attributes {stable_mosaic.version = 11 : i64} {
  func.func @kernel(%arg0: i32, %arg1: i32, %arg2: memref<1x4x256xf32, #tpu.memory_space<vmem>>, %arg3: memref<1x1x256xi32, #tpu.memory_space<vmem>>, %arg4: memref<1x3x256xf32, #tpu.memory_space<vmem>>, %arg5: memref<1x1x256xi32, #tpu.memory_space<vmem>>, %arg6: memref<1x4x256xf32, #tpu.memory_space<vmem>>, %arg7: memref<1x4x256xf32, #tpu.memory_space<vmem>>, %arg8: memref<1x3x256xf32, #tpu.memory_space<vmem>>, %arg9: memref<1x3x256xf32, #tpu.memory_space<vmem>>, %arg10: memref<1x1x256xf32, #tpu.memory_space<vmem>>) attributes {dimension_semantics = [#tpu.dimension_semantics<parallel>, #tpu.dimension_semantics<arbitrary>], iteration_bounds = array<i64: 2, 1>, scalar_prefetch = 0 : i64, scratch_operands = 0 : i64, tpu.core_type = #tpu.core_type<tc>, window_params = [{transform_indices = @transform_0, window_bounds = array<i64: 1, 4, 256>}, {transform_indices = @transform_1, window_bounds = array<i64: 1, 1, 256>}, {transform_indices = @transform_2, window_bounds = array<i64: 1, 3, 256>}, {transform_indices = @transform_3, window_bounds = array<i64: 1, 1, 256>}, {transform_indices = @transform_4, window_bounds = array<i64: 1, 4, 256>}, {transform_indices = @transform_5, window_bounds = array<i64: 1, 4, 256>}, {transform_indices = @transform_6, window_bounds = array<i64: 1, 3, 256>}, {transform_indices = @transform_7, window_bounds = array<i64: 1, 3, 256>}, {transform_indices = @transform_8, window_bounds = array<i64: 1, 1, 256>}]} {
    %c0_i32 = arith.constant 0 : i32
    %0 = arith.cmpi eq, %arg1, %c0_i32 : i32
    %1 = arith.extui %0 : i1 to i32
    %c0_i32_0 = arith.constant 0 : i32
    %2 = arith.cmpi ne, %1, %c0_i32_0 : i32
    scf.if %2 {
      %cst_48 = arith.constant 0.000000e+00 : f32
      %87 = vector.broadcast %cst_48 : f32 to vector<4x256xf32>
      %c0_49 = arith.constant 0 : index
      %c0_50 = arith.constant 0 : index
      %c0_51 = arith.constant 0 : index
      %88 = vector.load %arg6[%c0_49, %c0_50, %c0_51] : memref<1x4x256xf32, #tpu.memory_space<vmem>>, vector<1x4x256xf32>
      %89 = vector.shape_cast %88 : vector<1x4x256xf32> to vector<4x256xf32>
      %90 = vector.shape_cast %87 : vector<4x256xf32> to vector<1x4x256xf32>
      tpu.vector_store %arg6[%c0_49, %c0_50, %c0_51], %90 {strides = array<i32>} : memref<1x4x256xf32, #tpu.memory_space<vmem>>, vector<1x4x256xf32>,
      %cst_52 = arith.constant 0.000000e+00 : f32
      %91 = vector.broadcast %cst_52 : f32 to vector<4x256xf32>
      %c0_53 = arith.constant 0 : index
      %c0_54 = arith.constant 0 : index
      %c0_55 = arith.constant 0 : index
      %92 = vector.load %arg7[%c0_53, %c0_54, %c0_55] : memref<1x4x256xf32, #tpu.memory_space<vmem>>, vector<1x4x256xf32>
      %93 = vector.shape_cast %92 : vector<1x4x256xf32> to vector<4x256xf32>
      %94 = vector.shape_cast %91 : vector<4x256xf32> to vector<1x4x256xf32>
      tpu.vector_store %arg7[%c0_53, %c0_54, %c0_55], %94 {strides = array<i32>} : memref<1x4x256xf32, #tpu.memory_space<vmem>>, vector<1x4x256xf32>,
      %cst_56 = arith.constant 0.000000e+00 : f32
      %95 = vector.broadcast %cst_56 : f32 to vector<3x256xf32>
      %c0_57 = arith.constant 0 : index
      %c0_58 = arith.constant 0 : index
      %c0_59 = arith.constant 0 : index
      %96 = vector.load %arg8[%c0_57, %c0_58, %c0_59] : memref<1x3x256xf32, #tpu.memory_space<vmem>>, vector<1x3x256xf32>
      %97 = vector.shape_cast %96 : vector<1x3x256xf32> to vector<3x256xf32>
      %98 = vector.shape_cast %95 : vector<3x256xf32> to vector<1x3x256xf32>
      tpu.vector_store %arg8[%c0_57, %c0_58, %c0_59], %98 {strides = array<i32>} : memref<1x3x256xf32, #tpu.memory_space<vmem>>, vector<1x3x256xf32>,
      %cst_60 = arith.constant 0.000000e+00 : f32
      %99 = vector.broadcast %cst_60 : f32 to vector<3x256xf32>
      %c0_61 = arith.constant 0 : index
      %c0_62 = arith.constant 0 : index
      %c0_63 = arith.constant 0 : index
      %100 = vector.load %arg9[%c0_61, %c0_62, %c0_63] : memref<1x3x256xf32, #tpu.memory_space<vmem>>, vector<1x3x256xf32>
      %101 = vector.shape_cast %100 : vector<1x3x256xf32> to vector<3x256xf32>
      %102 = vector.shape_cast %99 : vector<3x256xf32> to vector<1x3x256xf32>
      tpu.vector_store %arg9[%c0_61, %c0_62, %c0_63], %102 {strides = array<i32>} : memref<1x3x256xf32, #tpu.memory_space<vmem>>, vector<1x3x256xf32>,
      %cst_64 = arith.constant 0.000000e+00 : f32
      %103 = vector.broadcast %cst_64 : f32 to vector<1x256xf32>
      %c0_65 = arith.constant 0 : index
      %c0_66 = arith.constant 0 : index
      %c0_67 = arith.constant 0 : index
      %104 = vector.load %arg10[%c0_65, %c0_66, %c0_67] : memref<1x1x256xf32, #tpu.memory_space<vmem>>, vector<1x1x256xf32>
      %105 = vector.shape_cast %104 : vector<1x1x256xf32> to vector<1x256xf32>
      %106 = vector.shape_cast %103 : vector<1x256xf32> to vector<1x1x256xf32>
      tpu.vector_store %arg10[%c0_65, %c0_66, %c0_67], %106 {strides = array<i32>} : memref<1x1x256xf32, #tpu.memory_space<vmem>>, vector<1x1x256xf32>,
    } else {
    }
    %c0 = arith.constant 0 : index
    %c0_1 = arith.constant 0 : index
    %c0_2 = arith.constant 0 : index
    %3 = vector.load %arg2[%c0, %c0_1, %c0_2] : memref<1x4x256xf32, #tpu.memory_space<vmem>>, vector<1x4x256xf32>
    %4 = vector.shape_cast %3 : vector<1x4x256xf32> to vector<4x256xf32>
    %c0_3 = arith.constant 0 : index
    %c0_4 = arith.constant 0 : index
    %c0_5 = arith.constant 0 : index
    %5 = vector.load %arg3[%c0_3, %c0_4, %c0_5] : memref<1x1x256xi32, #tpu.memory_space<vmem>>, vector<1x1x256xi32>
    %6 = vector.shape_cast %5 : vector<1x1x256xi32> to vector<1x256xi32>
    %7 = tpu.iota {dimensions = array<i32: 0>} : vector<4x256xi32>
    %8 = vector.broadcast %6 : vector<1x256xi32> to vector<4x256xi32>
    %9 = arith.cmpi eq, %7, %8 : vector<4x256xi32>
    %10 = arith.extui %9 : vector<4x256xi1> to vector<4x256xi32>
    %11 = arith.sitofp %10 : vector<4x256xi32> to vector<4x256xf32>
    %cst = arith.constant dense<0xFF800000> : vector<256xf32>
    %12 = vector.multi_reduction <maximumf>, %4, %cst [0] : vector<4x256xf32> to vector<256xf32>
    %13 = vector.shape_cast %12 : vector<256xf32> to vector<1x256xf32>
    %14 = vector.broadcast %13 : vector<1x256xf32> to vector<4x256xf32>
    %15 = arith.subf %4, %14 : vector<4x256xf32>
    %16 = math.exp %15 : vector<4x256xf32>
    %cst_6 = arith.constant dense<0.000000e+00> : vector<256xf32>
    %17 = vector.multi_reduction <add>, %16, %cst_6 [0] : vector<4x256xf32> to vector<256xf32>
    %18 = vector.shape_cast %17 : vector<256xf32> to vector<1x256xf32>
    %19 = math.log %18 : vector<1x256xf32>
    %20 = arith.addf %13, %19 : vector<1x256xf32>
    %21 = arith.mulf %11, %4 : vector<4x256xf32>
    %cst_7 = arith.constant dense<0.000000e+00> : vector<256xf32>
    %22 = vector.multi_reduction <add>, %21, %cst_7 [0] : vector<4x256xf32> to vector<256xf32>
    %23 = vector.shape_cast %22 : vector<256xf32> to vector<1x256xf32>
    %24 = arith.subf %20, %23 : vector<1x256xf32>
    %c0_8 = arith.constant 0 : index
    %c0_9 = arith.constant 0 : index
    %c0_10 = arith.constant 0 : index
    %25 = vector.load %arg6[%c0_8, %c0_9, %c0_10] : memref<1x4x256xf32, #tpu.memory_space<vmem>>, vector<1x4x256xf32>
    %26 = vector.shape_cast %25 : vector<1x4x256xf32> to vector<4x256xf32>
    %27 = vector.broadcast %24 : vector<1x256xf32> to vector<4x256xf32>
    %28 = arith.mulf %11, %27 : vector<4x256xf32>
    %29 = arith.addf %26, %28 : vector<4x256xf32>
    %c0_11 = arith.constant 0 : index
    %c0_12 = arith.constant 0 : index
    %c0_13 = arith.constant 0 : index
    %30 = vector.load %arg6[%c0_11, %c0_12, %c0_13] : memref<1x4x256xf32, #tpu.memory_space<vmem>>, vector<1x4x256xf32>
    %31 = vector.shape_cast %30 : vector<1x4x256xf32> to vector<4x256xf32>
    %32 = vector.shape_cast %29 : vector<4x256xf32> to vector<1x4x256xf32>
    tpu.vector_store %arg6[%c0_11, %c0_12, %c0_13], %32 {strides = array<i32>} : memref<1x4x256xf32, #tpu.memory_space<vmem>>, vector<1x4x256xf32>,
    %c0_14 = arith.constant 0 : index
    %c0_15 = arith.constant 0 : index
    %c0_16 = arith.constant 0 : index
    %33 = vector.load %arg7[%c0_14, %c0_15, %c0_16] : memref<1x4x256xf32, #tpu.memory_space<vmem>>, vector<1x4x256xf32>
    %34 = vector.shape_cast %33 : vector<1x4x256xf32> to vector<4x256xf32>
    %35 = arith.addf %34, %11 : vector<4x256xf32>
    %c0_17 = arith.constant 0 : index
    %c0_18 = arith.constant 0 : index
    %c0_19 = arith.constant 0 : index
    %36 = vector.load %arg7[%c0_17, %c0_18, %c0_19] : memref<1x4x256xf32, #tpu.memory_space<vmem>>, vector<1x4x256xf32>
    %37 = vector.shape_cast %36 : vector<1x4x256xf32> to vector<4x256xf32>
    %38 = vector.shape_cast %35 : vector<4x256xf32> to vector<1x4x256xf32>
    tpu.vector_store %arg7[%c0_17, %c0_18, %c0_19], %38 {strides = array<i32>} : memref<1x4x256xf32, #tpu.memory_space<vmem>>, vector<1x4x256xf32>,
    %c0_i32_20 = arith.constant 0 : i32
    %39 = vector.broadcast %c0_i32_20 : i32 to vector<1x256xi32>
    %40 = arith.cmpi sgt, %6, %39 : vector<1x256xi32>
    %c0_21 = arith.constant 0 : index
    %c0_22 = arith.constant 0 : index
    %c0_23 = arith.constant 0 : index
    %41 = vector.load %arg4[%c0_21, %c0_22, %c0_23] : memref<1x3x256xf32, #tpu.memory_space<vmem>>, vector<1x3x256xf32>
    %42 = vector.shape_cast %41 : vector<1x3x256xf32> to vector<3x256xf32>
    %c0_24 = arith.constant 0 : index
    %c0_25 = arith.constant 0 : index
    %c0_26 = arith.constant 0 : index
    %43 = vector.load %arg5[%c0_24, %c0_25, %c0_26] : memref<1x1x256xi32, #tpu.memory_space<vmem>>, vector<1x1x256xi32>
    %44 = vector.shape_cast %43 : vector<1x1x256xi32> to vector<1x256xi32>
    %45 = tpu.iota {dimensions = array<i32: 0>} : vector<3x256xi32>
    %46 = vector.broadcast %44 : vector<1x256xi32> to vector<3x256xi32>
    %47 = arith.cmpi eq, %45, %46 : vector<3x256xi32>
    %48 = vector.broadcast %40 : vector<1x256xi1> to vector<3x256xi1>
    %49 = arith.andi %47, %48 : vector<3x256xi1>
    %50 = arith.extui %49 : vector<3x256xi1> to vector<3x256xi32>
    %51 = arith.sitofp %50 : vector<3x256xi32> to vector<3x256xf32>
    %cst_27 = arith.constant dense<0xFF800000> : vector<256xf32>
    %52 = vector.multi_reduction <maximumf>, %42, %cst_27 [0] : vector<3x256xf32> to vector<256xf32>
    %53 = vector.shape_cast %52 : vector<256xf32> to vector<1x256xf32>
    %54 = vector.broadcast %53 : vector<1x256xf32> to vector<3x256xf32>
    %55 = arith.subf %42, %54 : vector<3x256xf32>
    %56 = math.exp %55 : vector<3x256xf32>
    %cst_28 = arith.constant dense<0.000000e+00> : vector<256xf32>
    %57 = vector.multi_reduction <add>, %56, %cst_28 [0] : vector<3x256xf32> to vector<256xf32>
    %58 = vector.shape_cast %57 : vector<256xf32> to vector<1x256xf32>
    %59 = math.log %58 : vector<1x256xf32>
    %60 = arith.addf %53, %59 : vector<1x256xf32>
    %61 = arith.mulf %51, %42 : vector<3x256xf32>
    %cst_29 = arith.constant dense<0.000000e+00> : vector<256xf32>
    %62 = vector.multi_reduction <add>, %61, %cst_29 [0] : vector<3x256xf32> to vector<256xf32>
    %63 = vector.shape_cast %62 : vector<256xf32> to vector<1x256xf32>
    %64 = arith.subf %60, %63 : vector<1x256xf32>
    %c0_30 = arith.constant 0 : index
    %c0_31 = arith.constant 0 : index
    %c0_32 = arith.constant 0 : index
    %65 = vector.load %arg8[%c0_30, %c0_31, %c0_32] : memref<1x3x256xf32, #tpu.memory_space<vmem>>, vector<1x3x256xf32>
    %66 = vector.shape_cast %65 : vector<1x3x256xf32> to vector<3x256xf32>
    %67 = vector.broadcast %64 : vector<1x256xf32> to vector<3x256xf32>
    %68 = arith.mulf %51, %67 : vector<3x256xf32>
    %69 = arith.addf %66, %68 : vector<3x256xf32>
    %c0_33 = arith.constant 0 : index
    %c0_34 = arith.constant 0 : index
    %c0_35 = arith.constant 0 : index
    %70 = vector.load %arg8[%c0_33, %c0_34, %c0_35] : memref<1x3x256xf32, #tpu.memory_space<vmem>>, vector<1x3x256xf32>
    %71 = vector.shape_cast %70 : vector<1x3x256xf32> to vector<3x256xf32>
    %72 = vector.shape_cast %69 : vector<3x256xf32> to vector<1x3x256xf32>
    tpu.vector_store %arg8[%c0_33, %c0_34, %c0_35], %72 {strides = array<i32>} : memref<1x3x256xf32, #tpu.memory_space<vmem>>, vector<1x3x256xf32>,
    %c0_36 = arith.constant 0 : index
    %c0_37 = arith.constant 0 : index
    %c0_38 = arith.constant 0 : index
    %73 = vector.load %arg9[%c0_36, %c0_37, %c0_38] : memref<1x3x256xf32, #tpu.memory_space<vmem>>, vector<1x3x256xf32>
    %74 = vector.shape_cast %73 : vector<1x3x256xf32> to vector<3x256xf32>
    %75 = arith.addf %74, %51 : vector<3x256xf32>
    %c0_39 = arith.constant 0 : index
    %c0_40 = arith.constant 0 : index
    %c0_41 = arith.constant 0 : index
    %76 = vector.load %arg9[%c0_39, %c0_40, %c0_41] : memref<1x3x256xf32, #tpu.memory_space<vmem>>, vector<1x3x256xf32>
    %77 = vector.shape_cast %76 : vector<1x3x256xf32> to vector<3x256xf32>
    %78 = vector.shape_cast %75 : vector<3x256xf32> to vector<1x3x256xf32>
    tpu.vector_store %arg9[%c0_39, %c0_40, %c0_41], %78 {strides = array<i32>} : memref<1x3x256xf32, #tpu.memory_space<vmem>>, vector<1x3x256xf32>,
    %c0_42 = arith.constant 0 : index
    %c0_43 = arith.constant 0 : index
    %c0_44 = arith.constant 0 : index
    %79 = vector.load %arg10[%c0_42, %c0_43, %c0_44] : memref<1x1x256xf32, #tpu.memory_space<vmem>>, vector<1x1x256xf32>
    %80 = vector.shape_cast %79 : vector<1x1x256xf32> to vector<1x256xf32>
    %81 = arith.extui %40 : vector<1x256xi1> to vector<1x256xi32>
    %82 = arith.sitofp %81 : vector<1x256xi32> to vector<1x256xf32>
    %83 = arith.addf %80, %82 : vector<1x256xf32>
    %c0_45 = arith.constant 0 : index
    %c0_46 = arith.constant 0 : index
    %c0_47 = arith.constant 0 : index
    %84 = vector.load %arg10[%c0_45, %c0_46, %c0_47] : memref<1x1x256xf32, #tpu.memory_space<vmem>>, vector<1x1x256xf32>
    %85 = vector.shape_cast %84 : vector<1x1x256xf32> to vector<1x256xf32>
    %86 = vector.shape_cast %83 : vector<1x256xf32> to vector<1x1x256xf32>
    tpu.vector_store %arg10[%c0_45, %c0_46, %c0_47], %86 {strides = array<i32>} : memref<1x1x256xf32, #tpu.memory_space<vmem>>, vector<1x1x256xf32>,
    return
  }
  func.func @transform_0(%arg0: i32, %arg1: i32) -> (i32, i32, i32) {
    %c0_i32 = arith.constant 0 : i32
    %c0_i32_0 = arith.constant 0 : i32
    return %arg0, %c0_i32, %arg1 : i32, i32, i32
  }
  func.func @transform_1(%arg0: i32, %arg1: i32) -> (i32, i32, i32) {
    %c0_i32 = arith.constant 0 : i32
    %c0_i32_0 = arith.constant 0 : i32
    return %arg0, %c0_i32, %arg1 : i32, i32, i32
  }
  func.func @transform_2(%arg0: i32, %arg1: i32) -> (i32, i32, i32) {
    %c0_i32 = arith.constant 0 : i32
    %c0_i32_0 = arith.constant 0 : i32
    return %arg0, %c0_i32, %arg1 : i32, i32, i32
  }
  func.func @transform_3(%arg0: i32, %arg1: i32) -> (i32, i32, i32) {
    %c0_i32 = arith.constant 0 : i32
    %c0_i32_0 = arith.constant 0 : i32
    return %arg0, %c0_i32, %arg1 : i32, i32, i32
  }
  func.func @transform_4(%arg0: i32, %arg1: i32) -> (i32, i32, i32) {
    %c0_i32 = arith.constant 0 : i32
    %c0_i32_0 = arith.constant 0 : i32
    %c0_i32_1 = arith.constant 0 : i32
    return %arg0, %c0_i32, %c0_i32_0 : i32, i32, i32
  }
  func.func @transform_5(%arg0: i32, %arg1: i32) -> (i32, i32, i32) {
    %c0_i32 = arith.constant 0 : i32
    %c0_i32_0 = arith.constant 0 : i32
    %c0_i32_1 = arith.constant 0 : i32
    return %arg0, %c0_i32, %c0_i32_0 : i32, i32, i32
  }
  func.func @transform_6(%arg0: i32, %arg1: i32) -> (i32, i32, i32) {
    %c0_i32 = arith.constant 0 : i32
    %c0_i32_0 = arith.constant 0 : i32
    %c0_i32_1 = arith.constant 0 : i32
    return %arg0, %c0_i32, %c0_i32_0 : i32, i32, i32
  }
  func.func @transform_7(%arg0: i32, %arg1: i32) -> (i32, i32, i32) {
    %c0_i32 = arith.constant 0 : i32
    %c0_i32_0 = arith.constant 0 : i32
    %c0_i32_1 = arith.constant 0 : i32
    return %arg0, %c0_i32, %c0_i32_0 : i32, i32, i32
  }
  func.func @transform_8(%arg0: i32, %arg1: i32) -> (i32, i32, i32) {
    %c0_i32 = arith.constant 0 : i32
    %c0_i32_0 = arith.constant 0 : i32
    %c0_i32_1 = arith.constant 0 : i32
    return %arg0, %c0_i32, %c0_i32_0 : i32, i32, i32
  }
}

</mosaic_0001>

<bundles_post_ra>
// kernel: tpu_custom_call.1
= control target key start
LH: loop header
LB: loop body
LE: loop exit
PB: predicated region body
PF: predicated region fallthrough
CT: control target
= control target key end

     0   :  { %14 = vsyncpa [#allocation3], 0  ;;  %s1709_s0 = inlined_call_operand.vmem [shape: f32[2,4,256], index: 0, kind: input, shape index: {}]   ;;  %s1710_s1 = inlined_call_operand.vmem [shape: s32[2,1,256], index: 1, kind: input, shape index: {}]   ;;  %s1711_s2 = inlined_call_operand.vmem [shape: f32[2,3,256], index: 2, kind: input, shape index: {}]   ;;  %s1712_s3 = inlined_call_operand.vmem [shape: s32[2,1,256], index: 3, kind: input, shape index: {}]   ;;  %s1713_s4 = inlined_call_operand.hbm [shape: f32[2,4,256], index: 4, kind: output, shape index: {0}]   ;;  %s1714_s5 = inlined_call_operand.hbm [shape: f32[2,4,256], index: 5, kind: output, shape index: {1}]   ;;  %s1715_s6 = inlined_call_operand.vmem [shape: f32[2,3,256], index: 6, kind: output, shape index: {2}]   ;;  %s1716_s7 = inlined_call_operand.vmem [shape: f32[2,3,256], index: 7, kind: output, shape index: {3}]   ;;  %s1717_s8 = inlined_call_operand.hbm [shape: f32[2,1,256], index: 8, kind: output, shape index: {4}]  }
   0x1   :  { %16 = vsyncpa [#allocation3 + $0x1], 0 }
   0x2   :  { %17 = vsyncpa [#allocation5], 0 }
   0x3   :  { %19 = vsyncpa [#allocation5 + $0x1], 0  ;;  %s1322_s27 = smov 0   ;;  %s1324_s28 = smov 0  }
   0x4   :  { %s1326_s29 = smov 0   ;;  %s1328_s30 = smov 0  }
   0x5   :  { %s1330_s9 = smov 0   ;;  %s1332_s10 = smov 0  }
   0x6 LB: > { %1726 = sst [smem:[#allocation9_spill]] %s1254_s28  ;;  %s1719_s11 = sadd.s32 4294967295, %s1270_s10   ;;  %s1270_s10 = sphi %s1332_s10, %s25_s10   ;;  %s1266_s9 = sphi %s1330_s9, %s1752_s9   ;;  %s1262_s30 = sphi %s1328_s30, %s1751_s30   ;;  %s1258_s29 = sphi %s1326_s29, %s1750_s29   ;;  %s1254_s28 = sphi %s1324_s28, %s1749_s28   ;;  %s1250_s27 = sphi %s1322_s27, %s1748_s27  }
   0x7   : > { %1727 = sst [smem:[#allocation10_spill]] %s1258_s29  ;;  %s1718_s12 = sadd.s32 4294967294, %s1270_s10  }
   0x8   : > { %1728 = sst [smem:[#allocation11_spill]] %s1266_s9  ;;  %s37_s13 = sadd.s32 1, %s1266_s9 }
   0x9   : > { %s156_s14 = sadd.s32 1, %s1258_s29  ;;  %p39_p0 = scmp.ge.s32.totalorder %s37_s13, 2 }
   0xa   : > { %p166_p1 = scmp.ne.s32.totalorder %s1258_s29, %s1254_s28  ;;  %p167_p2 = scmp.eq.s32.totalorder %s1719_s11, 1 }
   0xb   : > { %p172_p3 = scmp.ne.s32.totalorder %s1254_s28, %s1250_s27  ;;  %s1754_s13 = smov (%p39_p0, %s37_s13), 0 }
   0xc   : > { %1729 = sst [smem:[#allocation12_spill]] %s1754_s13  ;;  %p1364_p4 = por %p167_p2, %p166_p1 }
   0xd   : > { %p173_p5 = scmp.eq.s32.totalorder %s1718_s12, 1  ;;  %s153_s16 = ssub.s32 %s1266_s9, %s1754_s13 }
   0xe   : > { %p1014_p6 = scmp.ge.s32.totalorder %s1270_s10, 1  ;;  %p154_p7 = scmp.eq.s32.totalorder %s153_s16, 0 }
   0xf   : > { %p1373_p8 = por %p173_p5, %p172_p3  ;;  %p345_p9 = scmp.lt.s32.totalorder %s1270_s10, 3 }
  0x10   : > { %s1379_s18 = scalar_select %p154_p7, %s1258_s29, %s156_s14  }
  0x11   : > { %p346_p10 = pnand %p1014_p6, %p345_p9 }
  0x12   : > { %1732 = sst [smem:[#allocation13_spill]] %s1379_s18  ;;  %s1382_s19 = sand.u32 (!%p346_p10), 1, %s1254_s28   ;;  %v484_v0 = vlaneseq (!%p346_p10)  ;;  %v1272_v3 = vmov (!%p346_p10), 0.0   ;;  %vm510_vm1 = vcmask (!%p346_p10), 1043456   ;;  %vm622_vm2 = vcmask (!%p346_p10), 1042432  }
  0x13   : > { %349 = sbr.rel (%p346_p10) target bundleno = 148 (0x94), region = 36  ;;  %p429_p11 = scmp.lt.s32.totalorder (!%p346_p10), %s1262_s30, 1  ;;  %v1273_v36 = vmov (!%p346_p10), 0  }
  0x14   : > { %s1017_s20 = sshll.u32 (!%p346_p10), %s1382_s19, 1  ;;  %vm1386_vm0 = vcmp.lt.s32.totalorder (!%p346_p10), %v484_v0, 256  ;;  %v1390_v2 = vshrl.u32 (!%p346_p10), %v484_v0, 7  ;;  %s1725_s11 = sshll.u32 (!%p346_p10), %s1382_s19, 3 }
  0x15   : > { %s1392_s21 = scalar_lea.vmem (!%p346_p10), [#allocation6], %s1017_s20  ;;  %s1735_s28 = sadd.s32 (!%p346_p10), 4294967295, %s1270_s10  }
  0x16   : > { %488 = vst.msk [vmem:[%s1392_s21] sm:$0x3] (!%p346_p10), %vm1386_vm0, %v1272_v3  ;;  %v1402_v4 = vsub.s32 (!%p346_p10), 0, %v1390_v2  ;;  %v1405_v5 = vsub.s32 (!%p346_p10), 1, %v1390_v2  ;;  %s1471_s29 = sand.u32 (!%p346_p10), 1, %s1735_s28   ;;  %s1050_s16 = sshll.u32 (!%p346_p10), %s1262_s30, 5 }
  0x17   : > { %s715_s13 = scalar_lea.sflag (!%p346_p10), [#allocation5], %s1471_s29 }
  0x1a   : > { %s1399_s22 = scalar_select %p429_p11, %s1262_s30, 1 }
  0x1c   : > { %s1044_s23 = sshll.u32 %s1399_s22, 3  ;;  %s1020_s24 = sshll.u32 %s1399_s22, 1 }
  0x1d   : > { %s436_s14 = scalar_lea.vmem %s1709_s0, %s1044_s23  ;;  %s445_s12 = scalar_lea.vmem %s1710_s1, %s1020_s24  ;;  %v701_v45 = vld [vmem:[%s1392_s21] sm:$0x3] }
  0x1e   : > { %s455_s18 = scalar_lea.vmem %s1711_s2, %s1044_s23  ;;  %v1421_v6 = vld [vmem:[%s436_s14] sm:$0xff]  ;;  %s1428_s25 = scalar_lea.vmem %s1715_s6, %s1044_s23 }
  0x1f   : > { %v1423_v7 = vld [vmem:[%s445_s12] sm:$0x3]  ;;  %v511_v8 = vsel %vm510_vm1, %v1421_v6, -inf  ;;  %s1437_s9 = scalar_lea.vmem %s1716_s7, %s1044_s23  ;;  %v1445_v12 = vcombine.high %v1421_v6, %v1421_v6  ;;  %482 = vst [vmem:[%s1428_s25] sm:$0x77] %v1272_v3  ;;  %s1724_s12 = sshll.u32 %s1262_s30, 7 }
  0x20   : > { %v1432_v9 = vld [vmem:[%s455_s18] sm:$0x77]  ;;  %v496_v10 = vrot.slane %v1423_v7, %v1402_v4  ;;  %v500_v11 = vrot.slane %v1423_v7, %v1405_v5  ;;  %v512_v13 = vrot.slane %v511_v8, 4  ;;  %483 = vst [vmem:[%s1437_s9] sm:$0x77] %v1272_v3  ;;  %s464_s23 = scalar_lea.vmem %s1712_s3, %s1020_s24  ;;  %s406_s14 = scalar_lea.vmem [#allocation4], %s1725_s11  ;;  %vm589_vm5 = vcmp.gt.s32.totalorder %v1423_v7, 0 }
  0x21   : > { %v1451_v14 = vcombine.high %v1432_v9, %v1432_v9  ;;  %v623_v15 = vsel %vm622_vm2, %v1432_v9, -inf  ;;  %v518_v16 = vsel %vm510_vm1, %v1445_v12, -inf  ;;  %s758_s20 = sshll.u32 %s406_s14, 4  ;;  %v591_v31 = vld [vmem:[%s464_s23] sm:$0x3]  ;;  %s1489_s26 = scalar_lea.hbm %s1714_s5, %s1724_s12  ;;  %v602_v37 = vsel %vm589_vm5, 1, %v1273_v36  ;;  %s1491_s20 = int_to_ptr.vmem [resolvable:$true] %s758_s20 }
  0x22   : > { %vm501_vm3 = vcmp.eq.s32.totalorder %v1390_v2, %v496_v10  ;;  %vm502_vm4 = vcmp.eq.s32.totalorder %v1390_v2, %v500_v11  ;;  %v513_v17 = vmax.f32 %v511_v8, %v512_v13  ;;  %v624_v18 = vrot.slane %v623_v15, 4  ;;  %s1132_s18 = scalar_lea.vmem %s1491_s20, 128  ;;  %s1274_s23 = smov [#allocation4]  }
  0x23   : > { %v630_v19 = vsel %vm622_vm2, %v1451_v14, -inf  ;;  %v1464_v21 = vsel %vm501_vm3, 1.0, %v1272_v3  ;;  %v1467_v22 = vsel %vm502_vm4, 1.0, %v1272_v3  ;;  %v519_v23 = vrot.slane %v518_v16, 4  ;;  %p1133_p12 = scmp.ne.s32.totalorder %s1491_s20, %s1132_s18 }
  0x24   : > { %v631_v20 = vrot.slane %v630_v19, 4  ;;  %v514_v24 = vrot.slane %v513_v17, 2  ;;  %v625_v25 = vmax.f32 %v623_v15, %v624_v18  ;;  %v585_v26 = vcombine.low %v1464_v21, %v1467_v22 }
  0x25   : > { %v520_v28 = vmax.f32 %v518_v16, %v519_v23  ;;  %v606_v40 = vrot.slane %v602_v37, %v1402_v4  ;;  %v595_v41 = vrot.slane %v591_v31, %v1402_v4  ;;  %v599_v42 = vrot.slane %v591_v31, %v1405_v5  ;;  %p1134_p13 = pnand %p1133_p12, %p1364_p4 }
  0x26   : > { %v632_v27 = vmax.f32 %v630_v19, %v631_v20  ;;  %v515_v29 = vmax.f32 %v513_v17, %v514_v24  ;;  %v626_v30 = vrot.slane %v625_v25, 2  ;;  %588 = vst [vmem:[%s406_s14] sm:$0xff] %v585_v26  ;;  %v610_v44 = vrot.slane %v602_v37, %v1405_v5  ;;  %s1136_s14 = sshll.u32 %s1274_s23, 4  ;;  %s1137_s14 = int_to_ptr.vmem [resolvable:$false] %s1136_s14 }
  0x27   : > { %v521_v33 = vrot.slane %v520_v28, 2  ;;  %p1135_p0 = pneg %p1134_p13  ;;  %s1138_s22 = scalar_lea.vmem %s1137_s14, 256 }
  0x28   : > { %v633_v32 = vrot.slane %v632_v27, 2  ;;  %v516_v34 = vrot.slane %v515_v29, 1  ;;  %v627_v35 = vmax.f32 %v625_v25, %v626_v30  ;;  %p1139_p1 = scmp.lt.s32.totalorder %s1491_s20, %s1137_s14  ;;  %p1140_p2 = scmp.lt.s32.totalorder %s1138_s22, %s1132_s18 }
  0x29   : > { %v522_v39 = vmax.f32 %v520_v28, %v521_v33 }
  0x2a   : > { %v634_v38 = vmax.f32 %v632_v27, %v633_v32  ;;  %v628_v43 = vrot.slane %v627_v35, 1  ;;  %p1141_p3 = por %p1140_p2, %p1139_p1 }
  0x2c   : > { %p1142_p5 = pnand %p1141_p3, %p1135_p0 }
  0x2e   : > { %1145 = shalt.err (!%p1142_p5)
}
  0x2f   : > { %s1146_s24 = scalar_lea.hbm %s1489_s26, 128  ;;  %s1150_s23 = scalar_lea.hbm %s1714_s5, 256 }
  0x30   : > { %p1147_p6 = scmp.ne.s32.totalorder %s1489_s26, %s1146_s24  ;;  %p1151_p10 = scmp.lt.u32.totalorder %s1489_s26, %s1714_s5 }
  0x31   : > { %p1152_p11 = scmp.lt.u32.totalorder %s1150_s23, %s1146_s24  ;;  %p1154_p13 = scmp.lt.u32.totalorder %s1146_s24, %s1489_s26 }
  0x32   : > { %p1148_p7 = pnand %p1147_p6, %p1364_p4 }
  0x33   : > { %p1153_p12 = por %p1152_p11, %p1151_p10 }
  0x34   : > { %p1149_p9 = pneg %p1148_p7 }
  0x35   : > { %p1155_p0 = por %p1154_p13, %p1153_p12 }
  0x37   : > { %p1156_p1 = pnand %p1155_p0, %p1149_p9 }
  0x39   : > { %1159 = shalt.err (!%p1156_p1)
}
  0x3a   : > { %1052 = dma.vmem_to_hbm [thread:$0]  (%p1364_p4), %s1491_s20, 128, %s1489_s26, %s715_s13   ;;  %v1526_v46 = vmax.f32 %v515_v29, %v516_v34  ;;  %v635_v47 = vrot.slane %v634_v38, 1  ;;  %v523_v48 = vrot.slane %v522_v39, 1  ;;  %v1528_v49 = vmax.f32 %v627_v35, %v628_v43 }
  0x3b   : > { %vm1530_vm6 = vcmp.eq.s32.totalorder %v606_v40, 1  ;;  %v1032_v51 = vsel %vm589_vm5, 1.0, %v1272_v3  ;;  %vm1541_vm7 = vcmp.eq.s32.totalorder %v610_v44, 1  ;;  %s1550_s20 = scalar_lea.hbm %s1717_s8, %s1050_s16  ;;  %s1740_s26 = sshll.u32 %s1392_s21, 4  ;;  %vm1557_vm8 = vcmp.eq.s32.totalorder %v1390_v2, %v595_v41  ;;  %s1554_s26 = int_to_ptr.vmem [resolvable:$true] %s1740_s26 }
  0x3c   : > { %v1537_v52 = vmax.f32 %v634_v38, %v635_v47  ;;  %v1539_v53 = vmax.f32 %v522_v39, %v523_v48  ;;  %v703_v55 = vadd.f32 %v1032_v51, %v701_v45  ;;  %vm1562_vm9 = vcmp.eq.s32.totalorder %v1390_v2, %v599_v42  ;;  %vm613_vm10 = vmand %vm1557_vm8, %vm1530_vm6  ;;  %s1160_s16 = scalar_lea.vmem %s1554_s26, 32  ;;  %s1275_s28 = smov [#allocation6]  }
  0x3d   : > { %vm614_vm11 = vmand %vm1562_vm9, %vm1541_vm7  ;;  %p1161_p2 = scmp.ne.s32.totalorder %s1554_s26, %s1160_s16  ;;  %s1164_s18 = sshll.u32 %s1275_s28, 4  ;;  %s1165_s18 = int_to_ptr.vmem [resolvable:$false] %s1164_s18 }
  0x3e   : > { %v639_v58 = vcombine.low %v1528_v49, %v1537_v52  ;;  %v527_v59 = vcombine.low %v1526_v46, %v1539_v53  ;;  %708 = vst.msk [vmem:[%s1392_s21] sm:$0x3] %vm1386_vm0, %v703_v55  ;;  %s1166_s22 = scalar_lea.vmem %s1165_s18, 64  ;;  %p1167_p6 = scmp.lt.s32.totalorder %s1554_s26, %s1165_s18 }
  0x3f   : > { %p1162_p3 = pnand %p1161_p2, %p1364_p4  ;;  %p1168_p7 = scmp.lt.s32.totalorder %s1166_s22, %s1160_s16 }
  0x41   : > { %p1163_p5 = pneg %p1162_p3  ;;  %p1169_p9 = por %p1168_p7, %p1167_p6 }
  0x43   : > { %p1170_p10 = pnand %p1169_p9, %p1163_p5 }
  0x45   : > { %1173 = shalt.err (!%p1170_p10)
}
  0x46   : > { %s1174_s21 = scalar_lea.hbm %s1550_s20, 32  ;;  %s1178_s14 = scalar_lea.hbm %s1717_s8, 64 }
  0x47   : > { %p1175_p11 = scmp.ne.s32.totalorder %s1550_s20, %s1174_s21  ;;  %p1179_p0 = scmp.lt.u32.totalorder %s1550_s20, %s1717_s8 }
  0x48   : > { %p1180_p1 = scmp.lt.u32.totalorder %s1178_s14, %s1174_s21  ;;  %p1182_p3 = scmp.lt.u32.totalorder %s1174_s21, %s1550_s20 }
  0x49   : > { %p1176_p12 = pnand %p1175_p11, %p1364_p4 }
  0x4a   : > { %p1181_p2 = por %p1180_p1, %p1179_p0 }
  0x4b   : > { %p1177_p13 = pneg %p1176_p12 }
  0x4c   : > { %p1183_p5 = por %p1182_p3, %p1181_p2 }
  0x4e   : > { %p1184_p6 = pnand %p1183_p5, %p1177_p13 }
  0x50   : > { %1187 = shalt.err (!%p1184_p6)
}
  0x51   : > { %1053 = dma.vmem_to_hbm [thread:$0]  (%p1364_p4), %s1554_s26, 32, %s1550_s20, %s715_s13   ;;  %v641_v60 = vsub.f32 %v1432_v9, %v639_v58  ;;  %v529_v61 = vsub.f32 %v1421_v6, %v527_v59  ;;  %v1612_v62 = vsel %vm613_vm10, 1.0, %v1272_v3  ;;  %v1620_v63 = vsel %vm614_vm11, 1.0, %v1272_v3  ;;  %v694_v0 = vld [vmem:[%s1437_s9] sm:$0x77] }
  0x52   : > { %v697_v1 = vcombine.low %v1612_v62, %v1620_v63  ;;  %v667_v7 = vmul.f32 %v1612_v62, %v1432_v9  ;;  %v555_v8 = vmul.f32 %v1464_v21, %v1421_v6  ;;  %v668_v3 = vmul.f32 %v1620_v63, %v1451_v14  ;;  %s1746_s20 = sshll.u32 %s1262_s30, 7  ;;  %s710_s18 = scalar_lea.sflag [#allocation3], %s1382_s19 }
  0x53   : > { %v642_v2 = vmul.f32 1.442695, %v641_v60  ;;  %v530_v4 = vmul.f32 1.442695, %v529_v61  ;;  %v556_v13 = vmul.f32 %v1467_v22, %v1445_v12  ;;  %s1658_s28 = scalar_lea.hbm %s1713_s4, %s1746_s20  ;;  %s1276_s21 = smov [#allocation2]  }
  0x54   : > { %v699_v5 = vadd.f32 %v697_v1, %v694_v0  ;;  %v669_v9 = vsel %vm622_vm2, %v667_v7, 0.0  ;;  %v557_v20 = vsel %vm510_vm1, %v555_v8, 0.0  ;;  %v676_v12 = vsel %vm622_vm2, %v668_v3, 0.0  ;;  %s1192_s30 = sshll.u32 %s1276_s21, 4  ;;  %s1193_s30 = int_to_ptr.vmem [resolvable:$false] %s1192_s30 }
  0x55   : > { %1120 = vpow2.f32 %v642_v2  ;;  %v564_v26 = vsel %vm510_vm1, %v556_v13, 0.0  ;;  %v670_v29 = vrot.slane %v669_v9, 4  ;;  %v558_v30 = vrot.slane %v557_v20, 4  ;;  %s1194_s24 = scalar_lea.vmem %s1193_s30, 256 }
  0x56   : > { %1122 = vpow2.f32 %v530_v4  ;;  %700 = vst [vmem:[%s1437_s9] sm:$0x77] %v699_v5  ;;  %v677_v35 = vrot.slane %v676_v12, 4  ;;  %v565_v36 = vrot.slane %v564_v26, 4  ;;  %s1745_s9 = sshll.u32 %s1382_s19, 3 }
  0x57   : > { %v671_v41 = vadd.f32 %v670_v29, %v669_v9  ;;  %v559_v42 = vadd.f32 %v558_v30, %v557_v20  ;;  %s399_s29 = scalar_lea.vmem [#allocation2], %s1745_s9 }
  0x58   : > { %v678_v48 = vadd.f32 %v677_v35, %v676_v12  ;;  %v566_v50 = vadd.f32 %v565_v36, %v564_v26  ;;  %s744_s13 = sshll.u32 %s399_s29, 4  ;;  %s1660_s13 = int_to_ptr.vmem [resolvable:$true] %s744_s13 }
  0x59   : > { %v672_v57 = vrot.slane %v671_v41, 2  ;;  %v560_v58 = vrot.slane %v559_v42, 2  ;;  %s1188_s22 = scalar_lea.vmem %s1660_s13, 128  ;;  %p1195_p11 = scmp.lt.s32.totalorder %s1660_s13, %s1193_s30 }
  0x5a   : > { %v679_v61 = vrot.slane %v678_v48, 2  ;;  %v567_v0 = vrot.slane %v566_v50, 2  ;;  %p1189_p7 = scmp.ne.s32.totalorder %s1660_s13, %s1188_s22  ;;  %p1196_p12 = scmp.lt.s32.totalorder %s1194_s24, %s1188_s22 }
  0x5b   : > { %v673_v1 = vadd.f32 %v672_v57, %v671_v41  ;;  %v561_v2 = vadd.f32 %v560_v58, %v559_v42 }
  0x5c   : > { %v680_v4 = vadd.f32 %v679_v61, %v678_v48  ;;  %v568_v5 = vadd.f32 %v567_v0, %v566_v50  ;;  %p1190_p9 = pnand %p1189_p7, %p1364_p4  ;;  %p1197_p13 = por %p1196_p12, %p1195_p11 }
  0x5d   : > { %v674_v7 = vrot.slane %v673_v1, 1  ;;  %v562_v8 = vrot.slane %v561_v2, 1 }
  0x5e   : > { %p1191_p10 = pneg %p1190_p9 }
  0x5f   : > { %v1121_v10 = vpop.eup %1120 }
  0x60   : > { %v1123_v11 = vpop.eup %1122  ;;  %v645_v15 = vcombine.high %v1121_v10, %v1121_v10  ;;  %v647_v16 = vsel %vm622_vm2, %v1121_v10, 0.0  ;;  %v681_v10 = vrot.slane %v680_v4, 1  ;;  %p1198_p0 = pnand %p1197_p13, %p1191_p10 }
  0x61   : > { %v533_v17 = vcombine.high %v1123_v11, %v1123_v11  ;;  %v535_v18 = vsel %vm510_vm1, %v1123_v11, 0.0  ;;  %v648_v19 = vrot.slane %v647_v16, 4  ;;  %v569_v11 = vrot.slane %v568_v5, 1 }
  0x62   : > { %v536_v6 = vrot.slane %v535_v18, 4  ;;  %v654_v23 = vsel %vm622_vm2, %v645_v15, 0.0 }
  0x63   : > { %v542_v14 = vsel %vm510_vm1, %v533_v17, 0.0  ;;  %v649_v24 = vadd.f32 %v648_v19, %v647_v16  ;;  %v655_v25 = vrot.slane %v654_v23, 4  ;;  %v675_v16 = vadd.f32 %v674_v7, %v673_v1 }
  0x64   : > { %v537_v27 = vadd.f32 %v536_v6, %v535_v18  ;;  %v543_v28 = vrot.slane %v542_v14, 4  ;;  %v563_v19 = vadd.f32 %v562_v8, %v561_v2 }
  0x65   : > { %v650_v31 = vrot.slane %v649_v24, 2  ;;  %v656_v32 = vadd.f32 %v655_v25, %v654_v23  ;;  %v682_v23 = vadd.f32 %v681_v10, %v680_v4  ;;  %v570_v25 = vadd.f32 %v569_v11, %v568_v5 }
  0x66   : > { %v538_v33 = vrot.slane %v537_v27, 2  ;;  %v544_v34 = vadd.f32 %v543_v28, %v542_v14 }
  0x67   : > { %v651_v37 = vadd.f32 %v650_v31, %v649_v24  ;;  %v657_v38 = vrot.slane %v656_v32, 2 }
  0x68   : > { %v539_v39 = vadd.f32 %v538_v33, %v537_v27  ;;  %v545_v40 = vrot.slane %v544_v34, 2  ;;  %v685_v33 = vld [vmem:[%s1428_s25] sm:$0x77] }
  0x69   : > { %v652_v43 = vrot.slane %v651_v37, 1  ;;  %v658_v44 = vadd.f32 %v657_v38, %v656_v32 }
  0x6a   : > { %v540_v45 = vrot.slane %v539_v39, 1  ;;  %v546_v47 = vadd.f32 %v545_v40, %v544_v34 }
  0x6b   : > { %v653_v51 = vadd.f32 %v652_v43, %v651_v37  ;;  %v659_v54 = vrot.slane %v658_v44, 1 }
  0x6c   : > { %v541_v55 = vadd.f32 %v540_v45, %v539_v39  ;;  %v547_v56 = vrot.slane %v546_v47, 1 }
  0x6d   : > { %v660_v59 = vadd.f32 %v659_v54, %v658_v44  ;;  %1124 = vlog2.f32 %v653_v51 }
  0x6e   : > { %v548_v60 = vadd.f32 %v547_v56, %v546_v47  ;;  %1126 = vlog2.f32 %v541_v55 }
  0x6f   : > { %1128 = vlog2.f32 %v660_v59 }
  0x70   : > { %1130 = vlog2.f32 %v548_v60 }
  0x77   : > { %v1125_v3 = vpop.eup %1124 }
  0x78   : > { %v1127_v13 = vpop.eup %1126  ;;  %v662_v15 = vmul.f32 0.6931472, %v1125_v3 }
  0x79   : > { %v1129_v17 = vpop.eup %1128  ;;  %v550_v18 = vmul.f32 0.6931472, %v1127_v13 }
  0x7a   : > { %v1131_v9 = vpop.eup %1130  ;;  %v664_v20 = vmul.f32 0.6931472, %v1129_v17  ;;  %v665_v6 = vadd.f32 %v662_v15, %v1528_v49 }
  0x7b   : > { %v552_v14 = vmul.f32 0.6931472, %v1131_v9  ;;  %v553_v24 = vadd.f32 %v550_v18, %v1526_v46 }
  0x7c   : > { %v666_v12 = vadd.f32 %v664_v20, %v1537_v52  ;;  %v683_v26 = vsub.f32 %v665_v6, %v675_v16 }
  0x7d   : > { %v554_v27 = vadd.f32 %v552_v14, %v1539_v53  ;;  %v571_v28 = vsub.f32 %v553_v24, %v563_v19 }
  0x7e   : > { %v684_v29 = vsub.f32 %v666_v12, %v682_v23  ;;  %v686_v30 = vmul.f32 %v1612_v62, %v683_v26 }
  0x7f   : > { %v572_v31 = vsub.f32 %v554_v27, %v570_v25  ;;  %v574_v49 = vmul.f32 %v1464_v21, %v571_v28 }
  0x80   : > { %v687_v32 = vmul.f32 %v1620_v63, %v684_v29 }
  0x81   : > { %v575_v46 = vmul.f32 %v1467_v22, %v572_v31 }
  0x82   : > { %v690_v52 = vcombine.low %v686_v30, %v687_v32 }
  0x83   : > { %v578_v53 = vcombine.low %v574_v49, %v575_v46 }
  0x84   : > { %v692_v34 = vadd.f32 %v690_v52, %v685_v33 }
  0x85   : > { %581 = vst [vmem:[%s399_s29] sm:$0xff] %v578_v53 }
  0x86   : > { %693 = vst [vmem:[%s1428_s25] sm:$0x77] %v692_v34 }
  0x87   : > { %1201 = shalt.err (!%p1198_p0)
}
  0x88   : > { %s1202_s19 = scalar_lea.hbm %s1658_s28, 128  ;;  %s1206_s14 = scalar_lea.hbm %s1713_s4, 256 }
  0x89   : > { %p1203_p1 = scmp.ne.s32.totalorder %s1658_s28, %s1202_s19  ;;  %p1207_p5 = scmp.lt.u32.totalorder %s1658_s28, %s1713_s4 }
  0x8a   : > { %p1208_p6 = scmp.lt.u32.totalorder %s1206_s14, %s1202_s19  ;;  %p1210_p9 = scmp.lt.u32.totalorder %s1202_s19, %s1658_s28 }
  0x8b   : > { %p1204_p2 = pnand %p1203_p1, %p1364_p4 }
  0x8c   : > { %p1209_p7 = por %p1208_p6, %p1207_p5 }
  0x8d   : > { %p1205_p3 = pneg %p1204_p2 }
  0x8e   : > { %p1211_p10 = por %p1210_p9, %p1209_p7 }
  0x90   : > { %p1212_p11 = pnand %p1211_p10, %p1205_p3 }
  0x92   : > { %1215 = shalt.err (!%p1212_p11)
}
  0x93   : > { %1051 = dma.vmem_to_hbm [thread:$0]  (%p1364_p4), %s1660_s13, 128, %s1658_s28, %s710_s18  }
  0x94 PF: > { %p1067_p12 = scmp.ge.s32.totalorder %s1270_s10, 2  ;;  %s790_s9 = sand.u32 1, %s1250_s27  }
  0x95   : > { %s791_s29 = scalar_lea.sflag [#allocation3], %s790_s9 }
  0x96   : > { %p1058_p13 = pnand %p1067_p12, %p1373_p8 }
  0x98   : > { %1241 = dma.done.wait (!%p1058_p13), %s791_s29, 128  }
  0x99   : > { %1243 = vsyncadd (!%p1058_p13), %s791_s29, 4294967168  ;;  %s1747_s20 = sadd.s32 4294967294, %s1270_s10  }
  0x9a   : > { %s799_s26 = sand.u32 1, %s1747_s20  }
  0x9b   : > { %s800_s16 = scalar_lea.sflag [#allocation5], %s799_s26 }
  0x9c   : > { %1245 = dma.done.wait (!%p1058_p13), %s800_s16, 160  }
  0x9d   : > { %1247 = vsyncadd (!%p1058_p13), %s800_s16, 4294967136  ;;  %s25_s10 = sadd.s32 1, %s1270_s10   ;;  %s1748_s27 = sld [smem:[#allocation9_spill]] }
  0x9e   : > { %p22_p4 = scmp.ge.s32.totalorder %s25_s10, 4   ;;  %s1749_s28 = sld [smem:[#allocation10_spill]] }
  0x9f   : > { %s1750_s29 = sld [smem:[#allocation13_spill]]  ;;  %s1751_s30 = sld [smem:[#allocation11_spill]] }
  0xa0   : > { %s1752_s9 = sld [smem:[#allocation12_spill]]  ;;  %24 = sbr.rel (!%p22_p4) target bundleno = 6 (0x6), region = 140 }
  0xa7   :  { %830 = vsyncpa [#allocation3], 1 }
  0xa8   :  { %832 = vsyncpa [#allocation3 + $0x1], 1 }
  0xa9   :  { %833 = vsyncpa [#allocation5], 1 }
  0xaa   :  { %835 = vsyncpa [#allocation5 + $0x1], 1 }

</bundles_post_ra>
